<compile_context>
chip_gen: v7x
topology: tpu7x:2x2x1
jax: 0.10.0
libtpu: 0.0.40
codegen_flags: <defaults>
</compile_context>

<pallas_src>
import functools

import jax
import jax.numpy as jnp
from jax.experimental import pallas as pl
from jax.experimental.pallas import tpu as pltpu

_LANE = 128
# Cap the batch tile so the (hidden, tile) f32+bf16 activation temporaries plus
# double-buffered x/out blocks stay far below v7x's 64 MiB VMEM (and the 32 MiB
# default scoped limit) -- ~12 MiB at the cap with hidden=64.
_MAX_TILE = 16384


@functools.lru_cache(maxsize=None)
def _stride0_broadcast_ok() -> bool:
    """Probe whether this Pallas build supports stride-0 (sublane-broadcast) reads."""
    def probe(x_ref, o_ref):
        o_ref[...] = x_ref[pl.ds(0, 8, stride=0), :]
    try:
        out = pl.pallas_call(
            probe, out_shape=jax.ShapeDtypeStruct((8, _LANE), jnp.float32)
        )(jnp.ones((1, _LANE), jnp.float32))
        jax.block_until_ready(out)
        return bool(jnp.all(out == 1.0))
    except Exception:
        return False


def dqn_kernel(x_ref, w1_ref, w2_ref, w3_ref, b_ref, o_ref, *,
               use_stride0, precision):
    hidden, in_dim = w1_ref.shape
    out_dim = w3_ref.shape[0]
    mxu_dtype = w2_ref.dtype

    b1 = b_ref[0:hidden, :]                          # (hidden, 1)
    b2 = b_ref[hidden:2 * hidden, :]                 # (hidden, 1)
    b3 = b_ref[2 * hidden:2 * hidden + out_dim, :]   # (out_dim, 1)

    if use_stride0:
        def x_row(k):  # row k replicated to `hidden` sublanes in the vld slot
            return x_ref[pl.ds(k, hidden, stride=0), :]
    else:
        x_all = x_ref[...]                           # (in_dim, tile)

        def x_row(k):
            return x_all[k:k + 1, :]

    # ---- Layer 1 on the VPU: K=4 unrolled broadcast FMAs.  (An MXU matmul
    # would pad the contraction dim to 128/256 and waste >30x the work.)
    w1 = w1_ref[...]                                 # (hidden, in_dim), f32
    acc = b1 + w1[:, 0:1] * x_row(0)                 # (hidden, tile)
    for k in range(1, in_dim):                       # static unroll (in_dim=4)
        acc = acc + w1[:, k:k + 1] * x_row(k)
    h1 = jnp.maximum(acc, 0.0)

    # ---- Layer 2 on the MXU: bf16 (or f32) operands, f32 accumulation.
    h2 = jnp.dot(w2_ref[...], h1.astype(mxu_dtype),
                 precision=precision, preferred_element_type=jnp.float32)
    h2 = jnp.maximum(h2 + b2, 0.0)

    # ---- Layer 3: Q head (M=4, N=tile -> lane-dense output store).
    out = jnp.dot(w3_ref[...], h2.astype(mxu_dtype),
                  precision=precision, preferred_element_type=jnp.float32)
    o_ref[...] = (out + b3).astype(o_ref.dtype)


def pack_params(params, mxu_dtype=jnp.bfloat16):
    """Cast MXU weights once and fuse the three biases into one (2H+O, 1) array."""
    return {
        "w1": params["w1"].astype(jnp.float32),          # VPU layer stays f32
        "w2": params["w2"].astype(mxu_dtype),
        "w3": params["w3"].astype(mxu_dtype),
        "bias": jnp.concatenate(
            [params["b1"].reshape(-1, 1),
             params["b2"].reshape(-1, 1),
             params["b3"].reshape(-1, 1)], axis=0).astype(jnp.float32),
    }


def _pick_tile(batch, tile_b, num_tensorcores):
    b128 = pl.cdiv(batch, _LANE) * _LANE
    tile = max(_LANE, (min(int(tile_b), _MAX_TILE) // _LANE) * _LANE)
    tile = min(tile, b128)
    # Only split into >= num_tensorcores steps when the chip actually has
    # multiple TensorCores to shard the "parallel" axis across (v7x).
    if (num_tensorcores > 1 and b128 // tile < num_tensorcores
            and b128 >= num_tensorcores * _LANE):
        tile = max(_LANE, (b128 // num_tensorcores // _LANE) * _LANE)
    return tile


def dqn_forward_t(xt, packed, *, tile_b=8192, num_tensorcores=1, precision=None):
    """Feature-major forward: xt (in_dim, B) -> (out_dim, B).  No wrapper layout
    ops when B is already a multiple of the chosen tile."""
    in_dim, batch = xt.shape
    hidden = packed["w1"].shape[0]
    out_dim = packed["w3"].shape[0]

    tile = _pick_tile(batch, tile_b, num_tensorcores)
    b_pad = pl.cdiv(batch, tile) * tile
    if b_pad != batch:
        xt = jnp.pad(xt, ((0, 0), (0, b_pad - batch)))
    grid = (b_pad // tile,)

    flops = 2 * b_pad * (in_dim * hidden + hidden * hidden + hidden * out_dim)
    bytes_accessed = (
        4 * b_pad * (in_dim + out_dim)
        + packed["w1"].size * packed["w1"].dtype.itemsize
        + packed["w2"].size * packed["w2"].dtype.itemsize
        + packed["w3"].size * packed["w3"].dtype.itemsize
        + packed["bias"].size * 4)

    kernel = functools.partial(
        dqn_kernel, use_stride0=_stride0_broadcast_ok(), precision=precision)

    yt = pl.pallas_call(
        kernel,
        out_shape=jax.ShapeDtypeStruct((out_dim, b_pad), xt.dtype),
        grid_spec=pltpu.PrefetchScalarGridSpec(
            num_scalar_prefetch=0,
            grid=grid,
            in_specs=[
                pl.BlockSpec((in_dim, tile), lambda i: (0, i)),             # xT tile
                pl.BlockSpec((hidden, in_dim), lambda i: (0, 0)),           # w1 (f32)
                pl.BlockSpec((hidden, hidden), lambda i: (0, 0)),           # w2 (mxu dtype)
                pl.BlockSpec((out_dim, hidden), lambda i: (0, 0)),          # w3 (mxu dtype)
                pl.BlockSpec((2 * hidden + out_dim, 1), lambda i: (0, 0)),  # b1|b2|b3
            ],
            out_specs=pl.BlockSpec((out_dim, tile), lambda i: (0, i)),
        ),
        compiler_params=pltpu.CompilerParams(
            dimension_semantics=("parallel",)),
        cost_estimate=pl.CostEstimate(
            flops=int(flops), transcendentals=0,
            bytes_accessed=int(bytes_accessed)),
    )(xt, packed["w1"], packed["w2"], packed["w3"], packed["bias"])

    return yt if b_pad == batch else yt[:, :batch]


def dqn_forward(x, params, *, tile_b=8192, mxu_dtype=jnp.bfloat16,
                num_tensorcores=1, precision=None):
    """Batch-major, nn.Module-compatible forward: x (B, in_dim) -> (B, out_dim).
    For a transpose-free hot path keep data feature-major and use dqn_forward_t."""
    packed = pack_params(params, mxu_dtype=mxu_dtype)
    yt = dqn_forward_t(x.T, packed, tile_b=tile_b,
                       num_tensorcores=num_tensorcores, precision=precision)
    return yt.T


def init_params(key, in_dim=4, hidden=64, out_dim=4, dtype=jnp.float32):
    """PyTorch nn.Linear-style init (uniform +/- 1/sqrt(fan_in)), PyTorch layout."""
    keys = jax.random.split(key, 6)

    def linear(kw, kb, fan_in, fan_out):
        bound = 1.0 / jnp.sqrt(fan_in)
        w = jax.random.uniform(kw, (fan_out, fan_in), dtype, -bound, bound)  # (out, in)
        b = jax.random.uniform(kb, (fan_out, 1), dtype, -bound, bound)       # (out, 1)
        return w, b

    w1, b1 = linear(keys[0], keys[1], in_dim, hidden)
    w2, b2 = linear(keys[2], keys[3], hidden, hidden)
    w3, b3 = linear(keys[4], keys[5], hidden, out_dim)
    return {"w1": w1, "b1": b1, "w2": w2, "b2": b2, "w3": w3, "b3": b3}


def dqn_reference(x, p):
    h1 = jnp.maximum(x @ p["w1"].T + p["b1"].T, 0.0)
    h2 = jnp.maximum(h1 @ p["w2"].T + p["b2"].T, 0.0)
    return h2 @ p["w3"].T + p["b3"].T


if __name__ == "__main__":
    key = jax.random.PRNGKey(0)
    k_params, k_x, k_x2 = jax.random.split(key, 3)

    in_dim, hidden, out_dim = 4, 64, 4
    params = init_params(k_params, in_dim, hidden, out_dim)

    # 1) small batch (B=8), default bf16 MXU path vs. f32 reference
    batch = 8
    x = jax.random.normal(k_x, (batch, in_dim), dtype=jnp.float32)
    y = jax.block_until_ready(dqn_forward(x, params))
    y_ref = dqn_reference(x, params)
    assert y.shape == (batch, out_dim)
    assert jnp.allclose(y, y_ref, atol=2e-2, rtol=2e-2), "mismatch (bf16 MXU, B=8)"

    # 2) f32 MXU path on the same inputs (tolerance safe under any matmul
    #    precision default; pass precision=jax.lax.Precision.HIGHEST for tighter)
    y_f32 = jax.block_until_ready(dqn_forward(x, params, mxu_dtype=jnp.float32))
    assert jnp.allclose(y_f32, y_ref, atol=1e-2, rtol=1e-2), "mismatch (f32 MXU, B=8)"

    # 3) ragged batch + multi-step "parallel" grid (tile forced down to 128)
    batch2 = 200
    x2 = jax.random.normal(k_x2, (batch2, in_dim), dtype=jnp.float32)
    y2 = jax.block_until_ready(dqn_forward(x2, params, tile_b=128))
    y2_ref = dqn_reference(x2, params)
    assert y2.shape == (batch2, out_dim)
    assert jnp.allclose(y2, y2_ref, atol=2e-2, rtol=2e-2), "mismatch (bf16 MXU, B=200)"

    print("KERNEL_OK")
</pallas_src>

<mosaic_0001>
module attributes {stable_mosaic.version = 11 : i64} {
  func.func @probe(%arg0: memref<1x128xf32, #tpu.memory_space<vmem>>, %arg1: memref<8x128xf32, #tpu.memory_space<vmem>>) attributes {dimension_semantics = [], scalar_prefetch = 0 : i64, scratch_operands = 0 : i64, tpu.core_type = #tpu.core_type<tc>} {
    %c0 = arith.constant 0 : index
    %c0_0 = arith.constant 0 : index
    %0 = tpu.strided_load %arg0[%c0, %c0_0] {strides = array<i32: 0, 1>} : memref<1x128xf32, #tpu.memory_space<vmem>>, vector<8x128xf32>
    %c0_1 = arith.constant 0 : index
    %c0_2 = arith.constant 0 : index
    %1 = vector.load %arg1[%c0_1, %c0_2] : memref<8x128xf32, #tpu.memory_space<vmem>>, vector<8x128xf32>
    tpu.vector_store %arg1[%c0_1, %c0_2], %0 {strides = array<i32>} : memref<8x128xf32, #tpu.memory_space<vmem>>, vector<8x128xf32>,
    return
  }
}

module attributes {stable_mosaic.version = 11 : i64} {
  func.func @dqn_kernel(%arg0: i32, %arg1: memref<4x128xf32, #tpu.memory_space<vmem>>, %arg2: memref<64x4xf32, #tpu.memory_space<vmem>>, %arg3: memref<64x64xbf16, #tpu.memory_space<vmem>>, %arg4: memref<4x64xbf16, #tpu.memory_space<vmem>>, %arg5: memref<132x1xf32, #tpu.memory_space<vmem>>, %arg6: memref<4x128xf32, #tpu.memory_space<vmem>>) attributes {dimension_semantics = [#tpu.dimension_semantics<parallel>], iteration_bounds = array<i64: 1>, scalar_prefetch = 0 : i64, scratch_operands = 0 : i64, tpu.core_type = #tpu.core_type<tc>, window_params = [{transform_indices = @transform_0, window_bounds = array<i64: 4, 128>}, {pipeline_mode = #tpu.pipeline_mode<synchronous>, transform_indices = @transform_1, window_bounds = array<i64: 64, 4>}, {pipeline_mode = #tpu.pipeline_mode<synchronous>, transform_indices = @transform_2, window_bounds = array<i64: 64, 64>}, {pipeline_mode = #tpu.pipeline_mode<synchronous>, transform_indices = @transform_3, window_bounds = array<i64: 4, 64>}, {pipeline_mode = #tpu.pipeline_mode<synchronous>, transform_indices = @transform_4, window_bounds = array<i64: 132, 1>}, {transform_indices = @transform_5, window_bounds = array<i64: 4, 128>}]} {
    %c0 = arith.constant 0 : index
    %c0_0 = arith.constant 0 : index
    %0 = vector.load %arg5[%c0, %c0_0] : memref<132x1xf32, #tpu.memory_space<vmem>>, vector<64x1xf32>
    %c64 = arith.constant 64 : index
    %c0_1 = arith.constant 0 : index
    %1 = vector.load %arg5[%c64, %c0_1] : memref<132x1xf32, #tpu.memory_space<vmem>>, vector<64x1xf32>
    %c128 = arith.constant 128 : index
    %c0_2 = arith.constant 0 : index
    %2 = vector.load %arg5[%c128, %c0_2] : memref<132x1xf32, #tpu.memory_space<vmem>>, vector<4x1xf32>
    %c0_3 = arith.constant 0 : index
    %c0_4 = arith.constant 0 : index
    %3 = vector.load %arg1[%c0_3, %c0_4] : memref<4x128xf32, #tpu.memory_space<vmem>>, vector<4x128xf32>
    %c0_5 = arith.constant 0 : index
    %c0_6 = arith.constant 0 : index
    %4 = vector.load %arg2[%c0_5, %c0_6] : memref<64x4xf32, #tpu.memory_space<vmem>>, vector<64x4xf32>
    %5 = vector.extract_strided_slice %4 {offsets = [0, 0], sizes = [64, 1], strides = [1, 1]} : vector<64x4xf32> to vector<64x1xf32>
    %6 = vector.extract_strided_slice %3 {offsets = [0, 0], sizes = [1, 128], strides = [1, 1]} : vector<4x128xf32> to vector<1x128xf32>
    %7 = vector.broadcast %5 : vector<64x1xf32> to vector<64x128xf32>
    %8 = vector.broadcast %6 : vector<1x128xf32> to vector<64x128xf32>
    %9 = arith.mulf %7, %8 : vector<64x128xf32>
    %10 = vector.broadcast %0 : vector<64x1xf32> to vector<64x128xf32>
    %11 = arith.addf %10, %9 : vector<64x128xf32>
    %12 = vector.extract_strided_slice %4 {offsets = [0, 1], sizes = [64, 1], strides = [1, 1]} : vector<64x4xf32> to vector<64x1xf32>
    %13 = vector.extract_strided_slice %3 {offsets = [1, 0], sizes = [1, 128], strides = [1, 1]} : vector<4x128xf32> to vector<1x128xf32>
    %14 = vector.broadcast %12 : vector<64x1xf32> to vector<64x128xf32>
    %15 = vector.broadcast %13 : vector<1x128xf32> to vector<64x128xf32>
    %16 = arith.mulf %14, %15 : vector<64x128xf32>
    %17 = arith.addf %11, %16 : vector<64x128xf32>
    %18 = vector.extract_strided_slice %4 {offsets = [0, 2], sizes = [64, 1], strides = [1, 1]} : vector<64x4xf32> to vector<64x1xf32>
    %19 = vector.extract_strided_slice %3 {offsets = [2, 0], sizes = [1, 128], strides = [1, 1]} : vector<4x128xf32> to vector<1x128xf32>
    %20 = vector.broadcast %18 : vector<64x1xf32> to vector<64x128xf32>
    %21 = vector.broadcast %19 : vector<1x128xf32> to vector<64x128xf32>
    %22 = arith.mulf %20, %21 : vector<64x128xf32>
    %23 = arith.addf %17, %22 : vector<64x128xf32>
    %24 = vector.extract_strided_slice %4 {offsets = [0, 3], sizes = [64, 1], strides = [1, 1]} : vector<64x4xf32> to vector<64x1xf32>
    %25 = vector.extract_strided_slice %3 {offsets = [3, 0], sizes = [1, 128], strides = [1, 1]} : vector<4x128xf32> to vector<1x128xf32>
    %26 = vector.broadcast %24 : vector<64x1xf32> to vector<64x128xf32>
    %27 = vector.broadcast %25 : vector<1x128xf32> to vector<64x128xf32>
    %28 = arith.mulf %26, %27 : vector<64x128xf32>
    %29 = arith.addf %23, %28 : vector<64x128xf32>
    %cst = arith.constant 0.000000e+00 : f32
    %30 = vector.broadcast %cst : f32 to vector<64x128xf32>
    %31 = arith.maximumf %29, %30 : vector<64x128xf32>
    %c0_7 = arith.constant 0 : index
    %c0_8 = arith.constant 0 : index
    %32 = vector.load %arg3[%c0_7, %c0_8] : memref<64x64xbf16, #tpu.memory_space<vmem>>, vector<64x64xbf16>
    %33 = arith.truncf %31 : vector<64x128xf32> to vector<64x128xbf16>
    %cst_9 = arith.constant dense<0.000000e+00> : vector<64x128xf32>
    %34 = tpu.matmul %32, %33, %cst_9 {dimension_numbers = #tpu.dot_dimension_numbers<[1], [0], [0], [1], [0, 0, 1, 1], [], []>} : vector<64x64xbf16>, vector<64x128xbf16>, vector<64x128xf32> -> vector<64x128xf32>
    %35 = vector.broadcast %1 : vector<64x1xf32> to vector<64x128xf32>
    %36 = arith.addf %34, %35 : vector<64x128xf32>
    %cst_10 = arith.constant 0.000000e+00 : f32
    %37 = vector.broadcast %cst_10 : f32 to vector<64x128xf32>
    %38 = arith.maximumf %36, %37 : vector<64x128xf32>
    %c0_11 = arith.constant 0 : index
    %c0_12 = arith.constant 0 : index
    %39 = vector.load %arg4[%c0_11, %c0_12] : memref<4x64xbf16, #tpu.memory_space<vmem>>, vector<4x64xbf16>
    %40 = arith.truncf %38 : vector<64x128xf32> to vector<64x128xbf16>
    %cst_13 = arith.constant dense<0.000000e+00> : vector<4x128xf32>
    %41 = tpu.matmul %39, %40, %cst_13 {dimension_numbers = #tpu.dot_dimension_numbers<[1], [0], [0], [1], [0, 0, 1, 1], [], []>} : vector<4x64xbf16>, vector<64x128xbf16>, vector<4x128xf32> -> vector<4x128xf32>
    %42 = vector.broadcast %2 : vector<4x1xf32> to vector<4x128xf32>
    %43 = arith.addf %41, %42 : vector<4x128xf32>
    %c0_14 = arith.constant 0 : index
    %c0_15 = arith.constant 0 : index
    %44 = vector.load %arg6[%c0_14, %c0_15] : memref<4x128xf32, #tpu.memory_space<vmem>>, vector<4x128xf32>
    tpu.vector_store %arg6[%c0_14, %c0_15], %43 {strides = array<i32>} : memref<4x128xf32, #tpu.memory_space<vmem>>, vector<4x128xf32>,
    return
  }
  func.func @transform_0(%arg0: i32) -> (i32, i32) {
    %c0_i32 = arith.constant 0 : i32
    %c0_i32_0 = arith.constant 0 : i32
    return %c0_i32, %arg0 : i32, i32
  }
  func.func @transform_1(%arg0: i32) -> (i32, i32) {
    %c0_i32 = arith.constant 0 : i32
    %c0_i32_0 = arith.constant 0 : i32
    %c0_i32_1 = arith.constant 0 : i32
    return %c0_i32, %c0_i32_0 : i32, i32
  }
  func.func @transform_2(%arg0: i32) -> (i32, i32) {
    %c0_i32 = arith.constant 0 : i32
    %c0_i32_0 = arith.constant 0 : i32
    %c0_i32_1 = arith.constant 0 : i32
    return %c0_i32, %c0_i32_0 : i32, i32
  }
  func.func @transform_3(%arg0: i32) -> (i32, i32) {
    %c0_i32 = arith.constant 0 : i32
    %c0_i32_0 = arith.constant 0 : i32
    %c0_i32_1 = arith.constant 0 : i32
    return %c0_i32, %c0_i32_0 : i32, i32
  }
  func.func @transform_4(%arg0: i32) -> (i32, i32) {
    %c0_i32 = arith.constant 0 : i32
    %c0_i32_0 = arith.constant 0 : i32
    %c0_i32_1 = arith.constant 0 : i32
    return %c0_i32, %c0_i32_0 : i32, i32
  }
  func.func @transform_5(%arg0: i32) -> (i32, i32) {
    %c0_i32 = arith.constant 0 : i32
    %c0_i32_0 = arith.constant 0 : i32
    return %c0_i32, %arg0 : i32, i32
  }
}

</mosaic_0001>

<bundles_post_ra>
// kernel: tpu_custom_call.1
= control target key start
LH: loop header
LB: loop body
LE: loop exit
PB: predicated region body
PF: predicated region fallthrough
CT: control target
= control target key end

     0   :  { %6 = vsyncpa [#allocation3], 0  ;;  %s124_s0 = inlined_call_operand.hbm [shape: f32[1,128], index: 0, kind: input, shape index: {}]   ;;  %s125_s1 = inlined_call_operand.hbm [shape: f32[8,128], index: 1, kind: output, shape index: {}]  }
   0x1   :  { %7 = vsyncpa [#allocation4], 0  ;;  %s88_s6 = smov [#allocation2]   ;;  %s40_s10 = scalar_lea.hbm %s124_s0, 16 }
   0x2   :  { %s14_s7 = sshll.u32 %s88_s6, 4  ;;  %p41_p0 = scmp.ne.s32.totalorder %s124_s0, %s40_s10  ;;  %s15_s7 = int_to_ptr.vmem [resolvable:$true] %s14_s7 }
   0x3   :  { %p44_p1 = scmp.lt.u32.totalorder %s40_s10, %s124_s0 }
   0x5   :  { %p46_p2 = pnand %p44_p1, %p41_p0 }
   0x7   :  { %49 = shalt.err (!%p46_p2)
}
   0x8   :  { %s50_s15 = scalar_lea.vmem %s15_s7, 16  ;;  %s54_s16 = scalar_lea.vmem %s15_s7, 32 }
   0x9   :  { %p51_p3 = scmp.ne.s32.totalorder %s15_s7, %s50_s15  ;;  %p55_p4 = scmp.lt.s32.totalorder %s15_s7, %s15_s7 }
   0xa   :  { %p56_p5 = scmp.lt.s32.totalorder %s54_s16, %s50_s15 }
   0xc   :  { %p57_p6 = por %p56_p5, %p55_p4 }
   0xe   :  { %p58_p7 = pnand %p57_p6, %p51_p3 }
  0x10   :  { %61 = shalt.err (!%p58_p7)
}
  0x11   :  { %17 = dma.hbm_to_vmem [thread:$0]  %s124_s0, 16, %s15_s7, [#allocation3]  }
  0x12   :  { %84 = dma.done.wait [#allocation3], 16  }
  0x13   :  { %85 = vsyncadd [#allocation3], 4294967280  ;;  %s89_s19 = smov [#allocation5]   ;;  %v21_v0 = vld [vmem:[#allocation2] ss:$0 sm:$0xff] }
  0x14   :  { %s29_s20 = sshll.u32 %s89_s19, 4  ;;  %22 = vst [vmem:[#allocation5] sm:$0xff] %v21_v0  ;;  %s30_s20 = int_to_ptr.vmem [resolvable:$true] %s29_s20 }
  0x15   :  { %s62_s21 = scalar_lea.vmem %s30_s20, 128  ;;  %p67_p9 = scmp.lt.s32.totalorder %s30_s20, %s30_s20 }
  0x16   :  { %p63_p8 = scmp.ne.s32.totalorder %s30_s20, %s62_s21  ;;  %p68_p10 = scmp.lt.s32.totalorder %s62_s21, %s62_s21 }
  0x18   :  { %p69_p11 = por %p68_p10, %p67_p9 }
  0x1a   :  { %p70_p12 = pnand %p69_p11, %p63_p8 }
  0x1c   :  { %73 = shalt.err (!%p70_p12)
}
  0x1d   :  { %s74_s24 = scalar_lea.hbm %s125_s1, 128 }
  0x1e   :  { %p75_p13 = scmp.ne.s32.totalorder %s125_s1, %s74_s24  ;;  %p78_p0 = scmp.lt.u32.totalorder %s74_s24, %s125_s1 }
  0x20   :  { %p80_p1 = pnand %p78_p0, %p75_p13 }
  0x22   :  { %83 = shalt.err (!%p80_p1)
}
  0x23   :  { %32 = dma.vmem_to_hbm [thread:$0]  %s30_s20, 128, %s125_s1, [#allocation4]  }
  0x24   :  { %86 = dma.done.wait [#allocation4], 128  }
  0x25   :  { %87 = vsyncadd [#allocation4], 4294967168 }
  0x26   :  { %36 = vsyncpa [#allocation3], 1 }
  0x27   :  { %37 = vsyncpa [#allocation4], 1 }

// kernel: tpu_custom_call.1
= control target key start
LH: loop header
LB: loop body
LE: loop exit
PB: predicated region body
PF: predicated region fallthrough
CT: control target
= control target key end

     0   :  { %v648_v2 = vmov 2   ;;  %v649_v3 = vmov 0   ;;  %s865_s0 = inlined_call_operand.vmem [shape: f32[4,128], index: 0, kind: input, shape index: {}]   ;;  %s866_s1 = inlined_call_operand.vmem [shape: f32[64,4], index: 1, kind: input, shape index: {}]   ;;  %s867_s2 = inlined_call_operand.vmem [shape: bf16[64,64], index: 2, kind: input, shape index: {}]   ;;  %s868_s3 = inlined_call_operand.vmem [shape: bf16[4,64], index: 3, kind: input, shape index: {}]   ;;  %s869_s4 = inlined_call_operand.vmem [shape: f32[132,1], index: 4, kind: input, shape index: {}]   ;;  %s870_s5 = inlined_call_operand.hbm [shape: f32[4,128], index: 5, kind: output, shape index: {}]  }
   0x1   :  { %v42_v0 = vld [vmem:[%s866_s1 + $0x10] sm:$0xff]  ;;  %v22_v1 = vld [vmem:[%s869_s4] sm:$0xff]  ;;  %603 = vset.pattern.permute.xlu0 %v648_v2  ;;  %595 = vset.pattern.permute.xlu1 %v649_v3  ;;  %v23_v4 = vld [vmem:[%s869_s4 + $0x8] sm:$0xff] }
   0x2   :  { %209 = vperm.xlu0 %603, %v42_v0   ;;  %102 = vperm.xlu1 %595, %v22_v1   ;;  %v40_v5 = vld [vmem:[%s866_s1] sm:$0xff]  ;;  %v41_v6 = vld [vmem:[%s866_s1 + $0x8] sm:$0xff] }
   0x6   :  { %604 = vset.pattern.permute.xlu0 %v649_v3  ;;  %107 = vperm.xlu1 %595, %v23_v4  }
   0x7   :  { %50 = vperm.xlu0 %604, %v40_v5  }
   0x8   :  { %10 = vsyncpa [#allocation3], 0  ;;  %v650_v7 = vmov 1   ;;  %v43_v8 = vld [vmem:[%s866_s1 + $0x18] sm:$0xff]  ;;  %v24_v9 = vld [vmem:[%s869_s4 + $0x10] sm:$0xff]  ;;  %v651_v14 = vmov 3   ;;  %v88_v38 = vlaneseq }
   0x9   :  { %v27_v10 = vld [vmem:[%s869_s4 + $0x28] sm:$0xff]  ;;  %v47_v11 = vld [vmem:[%s866_s1 + $0x38] sm:$0xff]  ;;  %v28_v13 = vld [vmem:[%s869_s4 + $0x30] sm:$0xff]  ;;  %vm384_vm0 = vcmask 523264   ;;  %vm653_vm1 = vmmov 0   ;;  %s654_s25 = smov [#allocation2]  }
   0xa   :  { %596 = vset.pattern.permute.xlu1 %v650_v7  ;;  %v25_v12 = vld [vmem:[%s869_s4 + $0x18] sm:$0xff]  ;;  %v46_v15 = vld [vmem:[%s866_s1 + $0x30] sm:$0xff]  ;;  %v44_v16 = vld [vmem:[%s866_s1 + $0x20] sm:$0xff]  ;;  %v89_v42 = vshrl.u32 %v88_v38, 7  ;;  %s530_s26 = sshll.u32 %s654_s25, 4  ;;  %s531_s26 = int_to_ptr.vmem [resolvable:$true] %s530_s26 }
   0xb   :  { %55 = vperm.xlu0 %604, %v41_v6   ;;  %153 = vperm.xlu1 %596, %v41_v6   ;;  %v45_v17 = vld [vmem:[%s866_s1 + $0x28] sm:$0xff]  ;;  %v26_v18 = vld [vmem:[%s869_s4 + $0x20] sm:$0xff]  ;;  %v29_v19 = vld [vmem:[%s869_s4 + $0x38] sm:$0xff]  ;;  %s624_s27 = scalar_lea.vmem %s531_s26, 64  ;;  %p629_p1 = scmp.lt.s32.totalorder %s531_s26, %s531_s26 }
   0xc   :  { %v620_v20 = vld [vmem:[%s867_s2] sm:$0xff]   ;;  %v31_v25 = vld [vmem:[%s869_s4 + $0x48] sm:$0xff]  ;;  %v32_v29 = vld [vmem:[%s869_s4 + $0x50] sm:$0xff]  ;;  %v90_v45 = vsub.s32 0, %v89_v42  ;;  %v182_v50 = vsub.s32 1, %v89_v42  ;;  %v234_v52 = vsub.s32 2, %v89_v42  ;;  %p625_p0 = scmp.ne.s32.totalorder %s531_s26, %s624_s27  ;;  %p630_p2 = scmp.lt.s32.totalorder %s624_s27, %s624_s27 }
   0xd   :  { %568 = vmatprep.mubr.msk.bf16.mxu0 %vm384_vm0, %v620_v20  ;;  %v30_v26 = vld [vmem:[%s869_s4 + $0x40] sm:$0xff]  ;;  %v33_v30 = vld [vmem:[%s869_s4 + $0x58] sm:$0xff]  ;;  %v35_v33 = vld [vmem:[%s869_s4 + $0x68] sm:$0xff]  ;;  %v286_v57 = vsub.s32 3, %v89_v42 }
   0xe   :  { %v34_v32 = vld [vmem:[%s869_s4 + $0x60] sm:$0xff]  ;;  %v36_v36 = vld [vmem:[%s869_s4 + $0x70] sm:$0xff]  ;;  %v37_v37 = vld [vmem:[%s869_s4 + $0x78] sm:$0xff]  ;;  %p631_p3 = por %p630_p2, %p629_p1 }
   0xf   :  { %65 = vperm.xlu0 %604, %v43_v8   ;;  %597 = vset.pattern.permute.xlu1 %v649_v3  ;;  %v38_v41 = vld [vmem:[%s869_s4 + $0x80] sm:$0xf] }
  0x10   :  { %60 = vperm.xlu1 %597, %v42_v0   ;;  %v39_v46 = vld [vmem:[%s865_s0] sm:$0xf]  ;;  %p632_p4 = pnand %p631_p3, %p625_p0 }
  0x11   :  { %v792_v49 = vrot.slane %v39_v46, %v90_v45  ;;  %v795_v54 = vrot.slane %v39_v46, %v182_v50  ;;  %v798_v58 = vrot.slane %v39_v46, %v234_v52 }
  0x13   :  { %112 = vperm.xlu0 %604, %v24_v9  }
  0x14   :  { %598 = vset.pattern.permute.xlu1 %v648_v2 }
  0x15   :  { %201 = vperm.xlu1 %598, %v40_v5  }
  0x17   :  { %127 = vperm.xlu0 %604, %v27_v10  }
  0x19   :  { %205 = vperm.xlu1 %598, %v41_v6  }
  0x1b   :  { %85 = vperm.xlu0 %604, %v47_v11  }
  0x1d   :  { %599 = vset.pattern.permute.xlu1 %v649_v3 }
  0x1e   :  { %117 = vperm.xlu1 %599, %v25_v12  }
  0x1f   :  { %132 = vperm.xlu0 %604, %v28_v13  }
  0x22   :  { %600 = vset.pattern.permute.xlu1 %v650_v7 }
  0x23   :  { %611 = vset.pattern.permute.xlu0 %v650_v7  ;;  %161 = vperm.xlu1 %600, %v43_v8  }
  0x24   :  { %149 = vperm.xlu0 %611, %v40_v5  }
  0x27   :  { %601 = vset.pattern.permute.xlu1 %v651_v14 }
  0x28   :  { %157 = vperm.xlu0 %611, %v42_v0   ;;  %253 = vperm.xlu1 %601, %v40_v5  }
  0x2c   :  { %173 = vperm.xlu0 %611, %v46_v15   ;;  %602 = vset.pattern.permute.xlu1 %v649_v3 }
  0x2d   :  { %70 = vperm.xlu1 %602, %v44_v16  }
  0x30   :  { %613 = vset.pattern.permute.xlu0 %v651_v14 }
  0x31   :  { %257 = vperm.xlu0 %613, %v41_v6   ;;  %75 = vperm.xlu1 %602, %v45_v17  }
  0x35   :  { %261 = vperm.xlu0 %613, %v42_v0   ;;  %605 = vset.pattern.permute.xlu1 %v648_v2  ;;  %v801_v0 = vrot.slane %v39_v46, %v286_v57 }
  0x36   :  { %213 = vperm.xlu1 %605, %v43_v8  }
  0x39   :  { %273 = vperm.xlu0 %613, %v45_v17  }
  0x3a   :  { %606 = vset.pattern.permute.xlu1 %v649_v3 }
  0x3b   :  { %122 = vperm.xlu1 %606, %v26_v18  }
  0x3d   :  { %277 = vperm.xlu0 %613, %v46_v15  }
  0x3f   :  { %607 = vset.pattern.permute.xlu1 %v650_v7 }
  0x40   :  { %165 = vperm.xlu1 %607, %v44_v16  }
  0x41   :  { %618 = vset.pattern.permute.xlu0 %v649_v3 }
  0x42   :  { %326 = vperm.xlu0 %618, %v30_v26  }
  0x44   :  { %169 = vperm.xlu1 %607, %v45_v17  }
  0x46   :  { %341 = vperm.xlu0 %618, %v33_v30  }
  0x48   :  { %608 = vset.pattern.permute.xlu1 %v651_v14 }
  0x49   :  { %265 = vperm.xlu1 %608, %v43_v8  }
  0x4a   :  { %351 = vperm.xlu0 %618, %v35_v33  }
  0x4d   :  { %609 = vset.pattern.permute.xlu1 %v649_v3 }
  0x4e   :  { %80 = vperm.xlu1 %609, %v46_v15   ;;  %361 = vperm.xlu0 %618, %v37_v37  }
  0x52   :  { %610 = vset.pattern.permute.xlu1 %v648_v2 }
  0x53   :  { %217 = vperm.xlu1 %610, %v44_v16  }
  0x57   :  { %221 = vperm.xlu1 %610, %v45_v17  }
  0x5b   :  { %612 = vset.pattern.permute.xlu1 %v649_v3 }
  0x5c   :  { %137 = vperm.xlu1 %612, %v29_v19  }
  0x60   :  { %614 = vset.pattern.permute.xlu1 %v650_v7 }
  0x61   :  { %177 = vperm.xlu1 %614, %v47_v11  }
  0x65   :  { %615 = vset.pattern.permute.xlu1 %v651_v14 }
  0x66   :  { %269 = vperm.xlu1 %615, %v44_v16  }
  0x6a   :  { %616 = vset.pattern.permute.xlu1 %v648_v2 }
  0x6b   :  { %225 = vperm.xlu1 %616, %v46_v15  }
  0x6f   :  { %229 = vperm.xlu1 %616, %v47_v11  }
  0x73   :  { %617 = vset.pattern.permute.xlu1 %v651_v14 }
  0x74   :  { %281 = vperm.xlu1 %617, %v47_v11  }
  0x78   :  { %619 = vset.pattern.permute.xlu1 %v649_v3 }
  0x79   :  { %331 = vperm.xlu1 %619, %v31_v25  }
  0x7d   :  { %336 = vperm.xlu1 %619, %v32_v29  }
  0x81   :  { %v103_v21 = vpop.permute.xlu1 %102  ;;  %v752_v22 = vpop.permute.xlu0 %209  ;;  %346 = vperm.xlu1 %619, %v34_v32  }
  0x85   :  { %v108_v23 = vpop.permute.xlu1 %107  ;;  %356 = vperm.xlu1 %619, %v36_v36  }
  0x86   :  { %v51_v24 = vpop.permute.xlu0 %50 }
  0x87   :  { %v92_v53 = vmul.f32 %v792_v49, %v51_v24 }
  0x89   :  { %477 = vperm.xlu1 %619, %v38_v41   ;;  %v140_v59 = vadd.f32 %v103_v21, %v92_v53 }
  0x8a   :  { %v56_v27 = vpop.permute.xlu0 %55  ;;  %v154_v28 = vpop.permute.xlu1 %153 }
  0x8b   :  { %v93_v60 = vmul.f32 %v792_v49, %v56_v27  ;;  %v185_v5 = vmul.f32 %v795_v54, %v154_v28  ;;  %v238_v28 = vmul.f32 %v798_v58, %v752_v22 }
  0x8d   :  { %v141_v1 = vadd.f32 %v108_v23, %v93_v60 }
  0x8e   :  { %v766_v31 = vpop.permute.xlu0 %65 }
  0x8f   :  { %v61_v34 = vpop.permute.xlu1 %60  ;;  %v193_v9 = vadd.f32 %v185_v5, %v141_v1  ;;  %v95_v25 = vmul.f32 %v792_v49, %v766_v31 }
  0x90   :  { %v94_v21 = vmul.f32 %v792_v49, %v61_v34 }
  0x92   :  { %v113_v35 = vpop.permute.xlu0 %112 }
  0x93   :  { %v142_v26 = vadd.f32 %v113_v35, %v94_v21 }
  0x94   :  { %v202_v39 = vpop.permute.xlu1 %201 }
  0x95   :  { %v236_v2 = vmul.f32 %v798_v58, %v202_v39 }
  0x96   :  { %v780_v40 = vpop.permute.xlu0 %127 }
  0x98   :  { %v206_v43 = vpop.permute.xlu1 %205 }
  0x99   :  { %v237_v6 = vmul.f32 %v798_v58, %v206_v43 }
  0x9a   :  { %v785_v44 = vpop.permute.xlu0 %85 }
  0x9b   :  { %v245_v12 = vadd.f32 %v237_v6, %v193_v9 }
  0x9d   :  { %v118_v47 = vpop.permute.xlu1 %117 }
  0x9e   :  { %v790_v48 = vpop.permute.xlu0 %132  ;;  %v143_v33 = vadd.f32 %v118_v47, %v95_v25 }
  0xa2   :  { %v162_v51 = vpop.permute.xlu1 %161 }
  0xa3   :  { %v150_v55 = vpop.permute.xlu0 %149  ;;  %v187_v29 = vmul.f32 %v795_v54, %v162_v51 }
  0xa4   :  { %v184_v56 = vmul.f32 %v795_v54, %v150_v55 }
  0xa5   :  { %v195_v37 = vadd.f32 %v187_v29, %v143_v33  ;;  %v621_v33 = vld [vmem:[%s867_s2 + $0x8] sm:$0xff]  }
  0xa6   :  { %v192_v63 = vadd.f32 %v184_v56, %v140_v59 }
  0xa7   :  { %v158_v61 = vpop.permute.xlu0 %157  ;;  %v254_v62 = vpop.permute.xlu1 %253 }
  0xa8   :  { %v244_v7 = vadd.f32 %v236_v2, %v192_v63  ;;  %v288_v8 = vmul.f32 %v801_v0, %v254_v62  ;;  %v186_v23 = vmul.f32 %v795_v54, %v158_v61 }
  0xaa   :  { %v296_v13 = vadd.f32 %v288_v8, %v244_v7  ;;  %v194_v30 = vadd.f32 %v186_v23, %v142_v26 }
  0xab   :  { %v174_v3 = vpop.permute.xlu0 %173 }
  0xac   :  { %v71_v4 = vpop.permute.xlu1 %70  ;;  %v304_v16 = vmax.f32 %v296_v13, 0.0  ;;  %v246_v38 = vadd.f32 %v238_v28, %v194_v30  ;;  %v190_v46 = vmul.f32 %v795_v54, %v174_v3 }
  0xad   :  { %v96_v63 = vmul.f32 %v792_v49, %v71_v4 }
  0xb0   :  { %v258_v10 = vpop.permute.xlu0 %257  ;;  %v76_v11 = vpop.permute.xlu1 %75 }
  0xb1   :  { %v289_v14 = vmul.f32 %v801_v0, %v258_v10  ;;  %v97_v56 = vmul.f32 %v792_v49, %v76_v11 }
  0xb3   :  { %v297_v15 = vadd.f32 %v289_v14, %v245_v12  ;;  %v145_v60 = vadd.f32 %v780_v40, %v97_v56 }
  0xb4   :  { %v262_v27 = vpop.permute.xlu0 %261 }
  0xb5   :  { %v305_v17 = vmax.f32 %v297_v15, 0.0  ;;  %v214_v18 = vpop.permute.xlu1 %213  ;;  %v290_v36 = vmul.f32 %v801_v0, %v262_v27 }
  0xb6   :  { %v239_v34 = vmul.f32 %v798_v58, %v214_v18 }
  0xb7   :  { %v320_v19 = vpack.c.bf16 %v305_v17, %v304_v16  ;;  %v298_v41 = vadd.f32 %v290_v36, %v246_v38  ;;  %v99_v17 = vmul.f32 %v792_v49, %v785_v44  ;;  %v652_v36 = vmov 0.0  }
  0xb8   :  { %v247_v42 = vadd.f32 %v239_v34, %v195_v37  ;;  %v274_v62 = vpop.permute.xlu0 %273  ;;  %576 = vmatprep.subr.bf16.mxu1 %v652_v36  ;;  %584 = vmatprep.mubr.msk.bf16.mxu1 %vm653_vm1, %v652_v36 }
  0xb9   :  { %560 = vmatprep.subr.bf16.mxu0 %v320_v19  ;;  %v306_v43 = vmax.f32 %v298_v41, 0.0  ;;  %v293_v7 = vmul.f32 %v801_v0, %v274_v62 }
  0xba   :  { %561 = vmatpush3.bf16.msra.mxu0 %v320_v19  ;;  %v123_v20 = vpop.permute.xlu1 %122 }
  0xbb   :  { %v144_v3 = vadd.f32 %v123_v20, %v96_v63 }
  0xbc   :  { %v278_v20 = vpop.permute.xlu0 %277 }
  0xbd   :  { %v294_v26 = vmul.f32 %v801_v0, %v278_v20 }
  0xbf   :  { %v166_v24 = vpop.permute.xlu1 %165 }
  0xc0   :  { %v188_v1 = vmul.f32 %v795_v54, %v166_v24 }
  0xc1   :  { %v327_v37 = vpop.permute.xlu0 %326 }
  0xc2   :  { %v196_v8 = vadd.f32 %v188_v1, %v144_v3 }
  0xc3   :  { %v170_v32 = vpop.permute.xlu1 %169 }
  0xc4   :  { %v189_v59 = vmul.f32 %v795_v54, %v170_v32 }
  0xc8   :  { %v266_v39 = vpop.permute.xlu1 %265 }
  0xc9   :  { %v291_v31 = vmul.f32 %v801_v0, %v266_v39  ;;  %v342_v39 = vpop.permute.xlu0 %341 }
  0xcb   :  { %v299_v35 = vadd.f32 %v291_v31, %v247_v42 }
  0xcd   :  { %v307_v45 = vmax.f32 %v299_v35, 0.0  ;;  %v81_v22 = vpop.permute.xlu1 %80 }
  0xce   :  { %v98_v50 = vmul.f32 %v792_v49, %v81_v22 }
  0xcf   :  { %v321_v47 = vpack.c.bf16 %v307_v45, %v306_v43 }
  0xd0   :  { %v146_v51 = vadd.f32 %v790_v48, %v98_v50  ;;  %v197_v48 = vadd.f32 %v189_v59, %v145_v60  ;;  %v352_v50 = vpop.permute.xlu0 %351 }
  0xd1   :  { %562 = vmatprep.subr.bf16.mxu0 %v321_v47 }
  0xd2   :  { %563 = vmatpush3.bf16.msra.mxu0 %v321_v47  ;;  %v218_v52 = vpop.permute.xlu1 %217  ;;  %v198_v53 = vadd.f32 %v190_v46, %v146_v51 }
  0xd3   :  { %v240_v5 = vmul.f32 %v798_v58, %v218_v52 }
  0xd4   :  { %v362_v63 = vpop.permute.xlu0 %361 }
  0xd5   :  { %v248_v10 = vadd.f32 %v240_v5, %v196_v8 }
  0xd6   :  { %v222_v55 = vpop.permute.xlu1 %221 }
  0xd7   :  { %v241_v61 = vmul.f32 %v798_v58, %v222_v55 }
  0xd9   :  { %v249_v6 = vadd.f32 %v241_v61, %v197_v48 }
  0xdb   :  { %v138_v57 = vpop.permute.xlu1 %137  ;;  %v301_v11 = vadd.f32 %v293_v7, %v249_v6 }
  0xdc   :  { %v147_v21 = vadd.f32 %v138_v57, %v99_v17 }
  0xdd   :  { %v309_v13 = vmax.f32 %v301_v11, 0.0 }
  0xe0   :  { %v178_v2 = vpop.permute.xlu1 %177 }
  0xe1   :  { %v191_v18 = vmul.f32 %v795_v54, %v178_v2 }
  0xe3   :  { %v199_v25 = vadd.f32 %v191_v18, %v147_v21 }
  0xe5   :  { %v270_v9 = vpop.permute.xlu1 %269 }
  0xe6   :  { %v292_v40 = vmul.f32 %v801_v0, %v270_v9 }
  0xe8   :  { %v300_v12 = vadd.f32 %v292_v40, %v248_v10  ;;  %v470_v40 = vld [vmem:[%s868_s3] sm:$0x3] }
  0xea   :  { %v308_v14 = vmax.f32 %v300_v12, 0.0  ;;  %v226_v4 = vpop.permute.xlu1 %225 }
  0xeb   :  { %v242_v15 = vmul.f32 %v798_v58, %v226_v4 }
  0xec   :  { %v322_v16 = vpack.c.bf16 %v309_v13, %v308_v14 }
  0xed   :  { %v250_v23 = vadd.f32 %v242_v15, %v198_v53 }
  0xee   :  { %564 = vmatprep.subr.bf16.mxu0 %v322_v16  ;;  %v230_v19 = vpop.permute.xlu1 %229 }
  0xef   :  { %565 = vmatpush3.bf16.msra.mxu0 %v322_v16  ;;  %v243_v24 = vmul.f32 %v798_v58, %v230_v19  ;;  %v302_v28 = vadd.f32 %v294_v26, %v250_v23  ;;  %v622_v58 = vld [vmem:[%s867_s2 + $0x10] sm:$0xff]  }
  0xf1   :  { %v251_v29 = vadd.f32 %v243_v24, %v199_v25  ;;  %v310_v44 = vmax.f32 %v302_v28, 0.0 }
  0xf3   :  { %v282_v27 = vpop.permute.xlu1 %281 }
  0xf4   :  { %v295_v30 = vmul.f32 %v801_v0, %v282_v27  ;;  %v623_v0 = vld [vmem:[%s867_s2 + $0x18] sm:$0xff]  }
  0xf6   :  { %v303_v32 = vadd.f32 %v295_v30, %v251_v29 }
  0xf8   :  { %v311_v49 = vmax.f32 %v303_v32, 0.0  ;;  %v332_v34 = vpop.permute.xlu1 %331 }
  0xfa   :  { %v323_v54 = vpack.c.bf16 %v311_v49, %v310_v44 }
  0xfc   :  { %566 = vmatprep.subr.bf16.mxu0 %v323_v54  ;;  %v337_v38 = vpop.permute.xlu1 %336 }
  0xfd   :  { %567 = vmatpush3.bf16.msra.mxu0 %v323_v54 }
 0x100   :  { %569 = vmatmul.mubr.msk.bf16.vlgmr.msra.gmra.mrb[0].mxu0 %vm384_vm0, %v621_v33  ;;  %v347_v35 = vpop.permute.xlu1 %346 }
 0x101   :  { %572 = vmatprep.mubr.msk.bf16.mxu0 %vm384_vm0, %v622_v58 }
 0x104   :  { %v357_v57 = vpop.permute.xlu1 %356 }
 0x108   :  { %573 = vmatmul.mubr.msk.bf16.gmra.mrb[4].mxu0 %vm384_vm0, %v623_v0  ;;  %v478_v12 = vpop.permute.xlu1 %477 }
 0x1d3   :  { %v570_v41 = vpop.f32.mrb[0].mxu0 }
 0x1d4   :  { %v440_v42 = vadd.f32 %v570_v41, %v337_v38  ;;  %v431_v31 = vpop.f32.mrb[1].mxu0 }
 0x1d5   :  { %v432_v43 = vadd.f32 %v431_v31, %v327_v37  ;;  %v571_v45 = vpop.f32.mrb[2].mxu0 }
 0x1d6   :  { %v443_v22 = vadd.f32 %v571_v45, %v342_v39  ;;  %v434_v46 = vpop.f32.mrb[3].mxu0  ;;  %v464_v51 = vmax.f32 %v440_v42, 0.0 }
 0x1d7   :  { %v435_v47 = vadd.f32 %v434_v46, %v332_v34  ;;  %v462_v53 = vmax.f32 %v432_v43, 0.0 }
 0x1d8   :  { %v465_v52 = vmax.f32 %v443_v22, 0.0 }
 0x1d9   :  { %v463_v55 = vmax.f32 %v435_v47, 0.0 }
 0x1da   :  { %v472_v56 = vpack.c.bf16 %v465_v52, %v464_v51 }
 0x1db   :  { %v574_v59 = vpop.f32.mrb[4].mxu0  ;;  %v471_v60 = vpack.c.bf16 %v463_v55, %v462_v53 }
 0x1dc   :  { %v456_v61 = vadd.f32 %v574_v59, %v357_v57  ;;  %v447_v62 = vpop.f32.mrb[5].mxu0 }
 0x1dd   :  { %v448_v1 = vadd.f32 %v447_v62, %v347_v35  ;;  %v575_v48 = vpop.f32.mrb[6].mxu0  ;;  %577 = vmatpush3.bf16.msra.mxu1 %v471_v60 }
 0x1de   :  { %v459_v2 = vadd.f32 %v575_v48, %v362_v63  ;;  %v450_v3 = vpop.f32.mrb[7].mxu0  ;;  %578 = vmatprep.subr.bf16.mxu1 %v652_v36  ;;  %v468_v6 = vmax.f32 %v456_v61, 0.0 }
 0x1df   :  { %v451_v5 = vadd.f32 %v450_v3, %v352_v50  ;;  %v466_v8 = vmax.f32 %v448_v1, 0.0 }
 0x1e0   :  { %v469_v7 = vmax.f32 %v459_v2, 0.0 }
 0x1e1   :  { %v467_v9 = vmax.f32 %v451_v5, 0.0  ;;  %579 = vmatpush3.bf16.msra.mxu1 %v472_v56 }
 0x1e2   :  { %v474_v10 = vpack.c.bf16 %v469_v7, %v468_v6  ;;  %580 = vmatprep.subr.bf16.mxu1 %v652_v36 }
 0x1e3   :  { %v473_v11 = vpack.c.bf16 %v467_v9, %v466_v8 }
 0x1e5   :  { %581 = vmatpush3.bf16.msra.mxu1 %v473_v11 }
 0x1e6   :  { %582 = vmatprep.subr.bf16.mxu1 %v652_v36 }
 0x1e9   :  { %583 = vmatpush3.bf16.msra.mxu1 %v474_v10 }
 0x1ec   :  { %585 = vmatmul.mubr.msk.bf16.vlgmr.msra.gmra.mrb[0].mxu1 %vm384_vm0, %v470_v40 }
 0x2bf   :  { %v517_v13 = vpop.f32.mrb[0].mxu1 }
 0x2c0   :  { %v518_v14 = vadd.f32 %v517_v13, %v478_v12  ;;  %v586_v4 = vpop.f32.mrb[1].mxu1 }
 0x2c1   :  { %v520_v15 = vpop.f32.mrb[2].mxu1 }
 0x2c2   :  { %523 = vst [vmem:[#allocation2] sm:$0xf] %v518_v14  ;;  %v587_v16 = vpop.f32.mrb[3].mxu1 }
 0x2c3   :  { %635 = shalt.err (!%p632_p4)
}
 0x2c4   :  { %s636_s29 = scalar_lea.hbm %s870_s5, 64 }
 0x2c5   :  { %p637_p5 = scmp.ne.s32.totalorder %s870_s5, %s636_s29  ;;  %p640_p6 = scmp.lt.u32.totalorder %s636_s29, %s870_s5 }
 0x2c7   :  { %p642_p7 = pnand %p640_p6, %p637_p5 }
 0x2c9   :  { %645 = shalt.err (!%p642_p7)
}
 0x2ca   :  { %533 = dma.vmem_to_hbm [thread:$0]  %s531_s26, 64, %s870_s5, [#allocation3]  }
 0x2cb   :  { %646 = dma.done.wait [#allocation3], 64  }
 0x2cc   :  { %647 = vsyncadd [#allocation3], 4294967232 }
 0x2cd   :  { %537 = vsyncpa [#allocation3], 1 }

</bundles_post_ra>
